<compile_context>
chip_gen: v7x
topology: tpu7x:2x2x1
jax: 0.10.0
libtpu: 0.0.40
codegen_flags: <defaults>
</compile_context>

<pallas_src>
import functools
import math

import numpy as np

import jax
import jax.numpy as jnp
from jax import lax
from jax.experimental import pallas as pl
from jax.experimental.pallas import tpu as pltpu


def _make_rotary_kernel(tile_rows, lane_w):
    """Kernel writing one (tile_rows, lane_w) block of the fused cos|sin slab.

    freq_ref[0, c] = k * inv_freq[j(c)]                  (per-row angle step)
    off_ref[0, c]  = grp(c) * inv_freq[j(c)] + phase(c)  (per-lane offset; phase
                     is 0 for cos lanes and -pi/2 for sin lanes, so a single
                     jnp.cos covers both halves)
    Output value for slab row s, lane c:  cos(s * freq_ref[c] + off_ref[c]).
    """

    def kernel(freq_ref, off_ref, out_ref):
        i = pl.program_id(0)
        # Global slab-row index as a (tile_rows, 1) f32 column.
        row = (lax.broadcasted_iota(jnp.int32, (tile_rows, 1), 0)
               + i * tile_rows).astype(jnp.float32)
        # One mul + one add + one cos per element; everything else is rank-1.
        angle = row * freq_ref[...] + off_ref[...]
        out_ref[...] = jnp.cos(angle).astype(out_ref.dtype)

    return kernel


@functools.lru_cache(maxsize=16)
def _rotary_tables(seq_len, dim, base, dtype=jnp.float32):
    """Returns (cos, sin), each of shape (seq_len, dim // 2)."""
    assert dim % 2 == 0, "rotary dim must be even"
    half = dim // 2

    # Fold k consecutive sequence positions into the lane axis so the fused
    # cos|sin slab always has a lane-dense (multiple-of-128) last dimension.
    k = 1 if dim % 128 == 0 else 128 // math.gcd(dim, 128)
    lane_w = k * dim                      # == lcm(dim, 128)
    slab_rows = pl.cdiv(seq_len, k)       # ragged seq_len -> pad rows, slice later
    padded_seq = slab_rows * k

    # Per-lane constant rows, computed once on the host in float64 with the
    # exact power formula (matches the reference inv_freq; avoids exp() drift
    # for long sequences), then rounded to float32.
    c = np.arange(lane_w)
    grp = c // dim                        # which of the k folded positions
    d = c % dim                           # lane position within one (cos|sin) pair
    j = np.where(d < half, d, d - half).astype(np.float64)
    inv_freq = 1.0 / (float(base) ** (2.0 * j / dim))
    phase = np.where(d < half, 0.0, -np.pi / 2.0)     # cos(x - pi/2) == sin(x)
    lane_freq = jnp.asarray((k * inv_freq).astype(np.float32)).reshape(1, lane_w)
    lane_off = jnp.asarray((grp * inv_freq + phase).astype(np.float32)).reshape(1, lane_w)

    # Row tiling: large tiles (per-step overhead ~0.35us), multiples of 8, but
    # at least 2 grid steps whenever possible so the "parallel" axis can shard
    # across v7x's two TensorCores.
    if slab_rows <= 8:
        tile_rows = slab_rows             # single sub-8 block == full extent
    else:
        tile_rows = min(1024, 8 * pl.cdiv(pl.cdiv(slab_rows, 2), 8))
    grid = (pl.cdiv(slab_rows, tile_rows),)

    kernel = _make_rotary_kernel(tile_rows, lane_w)

    slab = pl.pallas_call(
        kernel,
        grid=grid,
        in_specs=[pl.BlockSpec((1, lane_w), lambda i: (0, 0)),
                  pl.BlockSpec((1, lane_w), lambda i: (0, 0))],
        out_specs=pl.BlockSpec((tile_rows, lane_w), lambda i: (i, 0)),
        out_shape=jax.ShapeDtypeStruct((slab_rows, lane_w), dtype),
        compiler_params=pltpu.CompilerParams(
            dimension_semantics=("parallel",)),
    )(lane_freq, lane_off)

    # Row-major unfold of the k-packing: (T'/k, k*D) -> (T', D), then slice the
    # ragged padding away. Pure layout, no extra compute.
    table = slab.reshape(padded_seq, dim)[:seq_len]
    return table[:, :half], table[:, half:]


def rotary_forward(x, base=10000.0):
    """Mirrors Rotary.forward(x) -> (cos[None,:,None,:], sin[None,:,None,:])."""
    seq_len = int(x.shape[1])
    dim = int(x.shape[3])
    cos, sin = _rotary_tables(seq_len, dim, float(base))
    return cos[None, :, None, :], sin[None, :, None, :]


if __name__ == "__main__":
    key = jax.random.PRNGKey(0)
    # batch=2, seq=8, heads=4, head_dim=32 (small shapes consistent w/ module)
    x = jax.random.normal(key, (2, 8, 4, 32), dtype=jnp.float32)

    cos, sin = rotary_forward(x)
    cos = jax.block_until_ready(cos)
    sin = jax.block_until_ready(sin)

    # Primary reference (plain-JAX mirror of the PyTorch semantics).
    B, T, H, D = x.shape
    inv_freq_ref = 1.0 / (10000.0 ** (jnp.arange(0, D, 2, dtype=jnp.float32) / D))
    freqs_ref = jnp.outer(jnp.arange(T, dtype=jnp.float32), inv_freq_ref)
    assert cos.shape == (1, T, 1, D // 2) and sin.shape == (1, T, 1, D // 2)
    assert jnp.allclose(cos[0, :, 0, :], jnp.cos(freqs_ref), atol=1e-5)
    assert jnp.allclose(sin[0, :, 0, :], jnp.sin(freqs_ref), atol=1e-5)

    # Secondary checks: ragged seq_len (partial k-fold), non-power-of-two head
    # dim, multiple grid steps with a partial last row block. Compared against
    # a float64 reference.
    for (T2, D2) in ((37, 32), (120, 80)):
        c2, s2 = _rotary_tables(T2, D2, 10000.0)
        c2 = jax.block_until_ready(c2)
        invf = 1.0 / (10000.0 ** (np.arange(0, D2, 2, dtype=np.float64) / D2))
        fr = np.outer(np.arange(T2, dtype=np.float64), invf)
        assert c2.shape == (T2, D2 // 2) and s2.shape == (T2, D2 // 2), (T2, D2)
        assert jnp.allclose(c2, jnp.asarray(np.cos(fr), jnp.float32), atol=1e-4), (T2, D2)
        assert jnp.allclose(s2, jnp.asarray(np.sin(fr), jnp.float32), atol=1e-4), (T2, D2)

    print("KERNEL_OK")
</pallas_src>

<mosaic_0001>
module attributes {stable_mosaic.version = 11 : i64} {
  func.func @kernel(%arg0: i32, %arg1: memref<1x128xf32, #tpu.memory_space<vmem>>, %arg2: memref<1x128xf32, #tpu.memory_space<vmem>>, %arg3: memref<2x128xf32, #tpu.memory_space<vmem>>) attributes {dimension_semantics = [#tpu.dimension_semantics<parallel>], iteration_bounds = array<i64: 1>, scalar_prefetch = 0 : i64, scratch_operands = 0 : i64, tpu.core_type = #tpu.core_type<tc>, window_params = [{pipeline_mode = #tpu.pipeline_mode<synchronous>, transform_indices = @transform_0, window_bounds = array<i64: 1, 128>}, {pipeline_mode = #tpu.pipeline_mode<synchronous>, transform_indices = @transform_1, window_bounds = array<i64: 1, 128>}, {transform_indices = @transform_2, window_bounds = array<i64: 2, 128>}]} {
    %0 = tpu.iota {dimensions = array<i32: 0>} : vector<2x1xi32>
    %c2_i32 = arith.constant 2 : i32
    %1 = arith.muli %arg0, %c2_i32 : i32
    %2 = vector.broadcast %1 : i32 to vector<2x1xi32>
    %3 = arith.addi %0, %2 : vector<2x1xi32>
    %4 = arith.sitofp %3 : vector<2x1xi32> to vector<2x1xf32>
    %c0 = arith.constant 0 : index
    %c0_0 = arith.constant 0 : index
    %5 = vector.load %arg1[%c0, %c0_0] : memref<1x128xf32, #tpu.memory_space<vmem>>, vector<1x128xf32>
    %6 = vector.broadcast %4 : vector<2x1xf32> to vector<2x128xf32>
    %7 = vector.broadcast %5 : vector<1x128xf32> to vector<2x128xf32>
    %8 = arith.mulf %6, %7 : vector<2x128xf32>
    %c0_1 = arith.constant 0 : index
    %c0_2 = arith.constant 0 : index
    %9 = vector.load %arg2[%c0_1, %c0_2] : memref<1x128xf32, #tpu.memory_space<vmem>>, vector<1x128xf32>
    %10 = vector.broadcast %9 : vector<1x128xf32> to vector<2x128xf32>
    %11 = arith.addf %8, %10 : vector<2x128xf32>
    %12 = math.cos %11 : vector<2x128xf32>
    %c0_3 = arith.constant 0 : index
    %c0_4 = arith.constant 0 : index
    %13 = vector.load %arg3[%c0_3, %c0_4] : memref<2x128xf32, #tpu.memory_space<vmem>>, vector<2x128xf32>
    tpu.vector_store %arg3[%c0_3, %c0_4], %12 {strides = array<i32>} : memref<2x128xf32, #tpu.memory_space<vmem>>, vector<2x128xf32>,
    return
  }
  func.func @transform_0(%arg0: i32) -> (i32, i32) {
    %c0_i32 = arith.constant 0 : i32
    %c0_i32_0 = arith.constant 0 : i32
    %c0_i32_1 = arith.constant 0 : i32
    return %c0_i32, %c0_i32_0 : i32, i32
  }
  func.func @transform_1(%arg0: i32) -> (i32, i32) {
    %c0_i32 = arith.constant 0 : i32
    %c0_i32_0 = arith.constant 0 : i32
    %c0_i32_1 = arith.constant 0 : i32
    return %c0_i32, %c0_i32_0 : i32, i32
  }
  func.func @transform_2(%arg0: i32) -> (i32, i32) {
    %c0_i32 = arith.constant 0 : i32
    %c0_i32_0 = arith.constant 0 : i32
    return %arg0, %c0_i32 : i32, i32
  }
}

</mosaic_0001>

<bundles_post_ra>
// kernel: tpu_custom_call.1
= control target key start
LH: loop header
LB: loop body
LE: loop exit
PB: predicated region body
PF: predicated region fallthrough
CT: control target
= control target key end

     0   :  { %7 = vsyncpa [#allocation3], 0  ;;  %s306_s0 = inlined_call_operand.hbm [shape: f32[1,128], index: 0, kind: input, shape index: {}]   ;;  %s307_s1 = inlined_call_operand.vmem [shape: f32[1,128], index: 1, kind: input, shape index: {}]   ;;  %s308_s2 = inlined_call_operand.hbm [shape: f32[2,128], index: 2, kind: output, shape index: {}]  }
   0x1   :  { %8 = vsyncpa [#allocation4], 0  ;;  %s235_s9 = smov [#allocation2]   ;;  %s187_s13 = scalar_lea.hbm %s306_s0, 16 }
   0x2   :  { %s15_s10 = sshll.u32 %s235_s9, 4  ;;  %p188_p0 = scmp.ne.s32.totalorder %s306_s0, %s187_s13  ;;  %s16_s10 = int_to_ptr.vmem [resolvable:$true] %s15_s10 }
   0x3   :  { %p191_p1 = scmp.lt.u32.totalorder %s187_s13, %s306_s0 }
   0x5   :  { %p193_p2 = pnand %p191_p1, %p188_p0 }
   0x7   :  { %196 = shalt.err (!%p193_p2)
}
   0x8   :  { %s197_s18 = scalar_lea.vmem %s16_s10, 16  ;;  %s201_s19 = scalar_lea.vmem %s16_s10, 32 }
   0x9   :  { %p198_p3 = scmp.ne.s32.totalorder %s16_s10, %s197_s18  ;;  %p202_p4 = scmp.lt.s32.totalorder %s16_s10, %s16_s10 }
   0xa   :  { %p203_p5 = scmp.lt.s32.totalorder %s201_s19, %s197_s18 }
   0xc   :  { %p204_p6 = por %p203_p5, %p202_p4 }
   0xe   :  { %p205_p7 = pnand %p204_p6, %p198_p3 }
  0x10   :  { %208 = shalt.err (!%p205_p7)
}
  0x11   :  { %18 = dma.hbm_to_vmem [thread:$0]  %s306_s0, 16, %s16_s10, [#allocation3]  }
  0x12   :  { %231 = dma.done.wait [#allocation3], 16  }
  0x13   :  { %232 = vsyncadd [#allocation3], 4294967280  ;;  %v24_v0 = vlaneseq  ;;  %v165_v3 = vld [vmem:[#allocation2] ss:$0 sm:$0xff]  ;;  %v236_v18 = vmov 683565275  }
  0x14   :  { %v166_v4 = vld [vmem:[%s307_s1] ss:$0 sm:$0xff]  ;;  %v237_v20 = vmov 2475754826   ;;  %v238_v22 = vmov 2131351028  }
  0x15   :  { %v25_v1 = vshrl.u32 %v24_v0, 7  ;;  %v239_v24 = vmov 2102212464   ;;  %v240_v26 = vmov 920167782   ;;  %s242_s0 = smov [#allocation5]  }
  0x16   :  { %v241_v33 = vmov 1326507024   ;;  %s156_s1 = sshll.u32 %s242_s0, 4  ;;  %s157_s1 = int_to_ptr.vmem [resolvable:$true] %s156_s1 }
  0x17   :  { %v29_v2 = vcvt.s32.f32 %v25_v1  ;;  %s209_s24 = scalar_lea.vmem %s157_s1, 32  ;;  %p214_p9 = scmp.lt.s32.totalorder %s157_s1, %s157_s1 }
  0x18   :  { %p210_p8 = scmp.ne.s32.totalorder %s157_s1, %s209_s24  ;;  %p215_p10 = scmp.lt.s32.totalorder %s209_s24, %s209_s24 }
  0x19   :  { %v37_v5 = vmul.f32 %v165_v3, %v29_v2 }
  0x1a   :  { %p216_p11 = por %p215_p10, %p214_p9 }
  0x1b   :  { %v273_v6 = vadd.f32 %v166_v4, %v37_v5 }
  0x1c   :  { %p217_p12 = pnand %p216_p11, %p210_p8 }
  0x1d   :  { %v49_v7 = vand.u32 2139095040, %v273_v6  ;;  %v46_v9 = vand.u32 2147483647, %v273_v6  ;;  %vm48_vm7 = vcmp.lt.s32.totalorder %v273_v6, 0  ;;  %vm138_vm12 = vweird.f32 %v273_v6 }
  0x1f   :  { %v50_v8 = vshrl.u32 %v49_v7, 23  ;;  %v53_v12 = vand.u32 8388607, %v46_v9  ;;  %vm47_vm8 = vcmp.le.f32.partialorder %v46_v9, 0.7853982 }
  0x21   :  { %v167_v10 = vadd.s32 4294967169, %v50_v8  ;;  %v54_v15 = vor.u32 8388608, %v53_v12 }
  0x23   :  { %v56_v11 = vadd.s32 1, %v167_v10  ;;  %v94_v35 = vshll.u32 %v54_v15, 8 }
  0x25   :  { %vm57_vm0 = vcmp.gt.s32.totalorder %v56_v11, 0 }
  0x26   :  { %v58_v13 = vsel %vm57_vm0, %v56_v11, 0 }
  0x27   :  { %v60_v14 = vand.u32 31, %v58_v13  ;;  %v59_v16 = vshrl.u32 %v58_v13, 5 }
  0x29   :  { %v61_v17 = vsub.s32 32, %v60_v14  ;;  %v63_v19 = vshll.u32 %v236_v18, %v60_v14  ;;  %v66_v21 = vshll.u32 %v237_v20, %v60_v14  ;;  %v69_v23 = vshll.u32 %v238_v22, %v60_v14 }
  0x2a   :  { %v72_v25 = vshll.u32 %v239_v24, %v60_v14  ;;  %v75_v27 = vshll.u32 %v240_v26, %v60_v14  ;;  %vm78_vm1 = vcmp.lt.s32.totalorder %v59_v16, 1  ;;  %vm81_vm2 = vcmp.lt.s32.totalorder %v59_v16, 4 }
  0x2b   :  { %v62_v28 = vshrl.u32 %v236_v18, %v61_v17  ;;  %v64_v29 = vshrl.u32 %v237_v20, %v61_v17  ;;  %v67_v30 = vshrl.u32 %v238_v22, %v61_v17  ;;  %v70_v31 = vshrl.u32 %v239_v24, %v61_v17 }
  0x2c   :  { %v73_v32 = vshrl.u32 %v240_v26, %v61_v17  ;;  %v76_v34 = vshrl.u32 %v241_v33, %v61_v17  ;;  %vm79_vm3 = vcmp.lt.s32.totalorder %v59_v16, 2  ;;  %vm80_vm4 = vcmp.lt.s32.totalorder %v59_v16, 3 }
  0x2d   :  { %v65_v36 = vor.u32 %v64_v29, %v63_v19  ;;  %v68_v37 = vor.u32 %v67_v30, %v66_v21  ;;  %v71_v38 = vor.u32 %v70_v31, %v69_v23 }
  0x2e   :  { %v74_v39 = vor.u32 %v73_v32, %v72_v25  ;;  %v77_v40 = vor.u32 %v76_v34, %v75_v27 }
  0x2f   :  { %v82_v41 = vsel %vm78_vm1, %v62_v28, %v65_v36  ;;  %v83_v42 = vsel %vm81_vm2, %v71_v38, 2102212464  ;;  %v86_v43 = vsel %vm78_vm1, %v65_v36, %v68_v37  ;;  %v90_v44 = vsel %vm78_vm1, %v68_v37, %v71_v38 }
  0x30   :  { %v84_v45 = vsel %vm80_vm4, %v68_v37, %v83_v42  ;;  %v87_v46 = vsel %vm81_vm2, %v74_v39, 920167782  ;;  %v91_v47 = vsel %vm81_vm2, %v77_v40, 1326507024 }
  0x31   :  { %v88_v48 = vsel %vm80_vm4, %v71_v38, %v87_v46  ;;  %v92_v49 = vsel %vm80_vm4, %v74_v39, %v91_v47  ;;  %v85_v50 = vsel %vm79_vm3, %v82_v41, %v84_v45 }
  0x32   :  { %v89_v51 = vsel %vm79_vm3, %v86_v43, %v88_v48  ;;  %v93_v52 = vsel %vm79_vm3, %v90_v44, %v92_v49  ;;  %v101_v57 = vmul.u32 %v94_v35, %v85_v50 }
  0x33   :  { %v279_v53 = vmul.u32.u64.low %v94_v35, %v93_v52  ;;  %v280_v54 = vmul.u32.u64.high %v94_v35, %v93_v52, %v279_v53  ;;  %v282_v55 = vmul.u32.u64.low %v94_v35, %v89_v51  ;;  %v283_v56 = vmul.u32.u64.high %v94_v35, %v89_v51, %v282_v55 }
  0x35   :  { %vm103_vm5 = vc.u32 %v280_v54, %v282_v55  ;;  %v104_v58 = vadd.s32 1, %v283_v56  ;;  %v102_v5 = vadd.s32 %v282_v55, %v280_v54 }
  0x37   :  { %v105_v59 = vsel %vm103_vm5, %v104_v58, %v283_v56 }
  0x38   :  { %v106_v60 = vadd.s32 %v105_v59, %v101_v57 }
  0x3a   :  { %v107_v61 = vadd.s32 536870912, %v106_v60 }
  0x3c   :  { %v108_v62 = vshrl.u32 %v107_v61, 30 }
  0x3e   :  { %v109_v63 = vshll.u32 %v108_v62, 30  ;;  %v132_v21 = vsub.s32 4, %v108_v62 }
  0x40   :  { %v110_v0 = vsub.s32 %v106_v60, %v109_v63  ;;  %v133_v24 = vsel %vm48_vm7, %v132_v21, %v108_v62 }
  0x41   :  { %v135_v25 = vsel %vm47_vm8, 0, %v133_v24 }
  0x42   :  { %v112_v1 = vsub.s32 0, %v110_v0  ;;  %v139_v26 = vand.u32 3, %v135_v25 }
  0x44   :  { %v168_v2 = vmin.u32 %v112_v1, %v110_v0  ;;  %vm144_vm9 = vcmp.eq.s32.totalorder %v139_v26, 2  ;;  %vm141_vm10 = vcmp.eq.s32.totalorder %v139_v26, 0  ;;  %vm140_vm11 = vcmp.lt.s32.totalorder %v139_v26, 2 }
  0x46   :  { %v114_v3 = vclz %v168_v2 }
  0x48   :  { %v169_v4 = vadd.s32 4294967294, %v114_v3 }
  0x4a   :  { %vm170_vm6 = vcmp.lt.s32.totalorder %v169_v4, 0 }
  0x4b   :  { %v117_v7 = vsel %vm170_vm6, 0, %v169_v4 }
  0x4c   :  { %v118_v8 = vsub.s32 32, %v117_v7  ;;  %v119_v10 = vshll.u32 %v110_v0, %v117_v7  ;;  %v122_v11 = vsub.s32 4294967266, %v117_v7 }
  0x4e   :  { %v120_v12 = vshrl.u32 %v102_v5, %v118_v8  ;;  %v123_v13 = vadd.s32 127, %v122_v11 }
  0x50   :  { %v121_v14 = vor.u32 %v120_v12, %v119_v10  ;;  %v124_v15 = vshll.u32 %v123_v13, 23 }
  0x52   :  { %v125_v16 = vor.u32 4788187, %v124_v15  ;;  %v128_v17 = vcvt.s32.f32 %v121_v14 }
  0x54   :  { %v126_v18 = vand.u32 2147483647, %v125_v16 }
  0x56   :  { %v129_v19 = vmul.f32 %v128_v17, %v126_v18 }
  0x58   :  { %v130_v20 = vxor.u32 2147483648, %v129_v19 }
  0x5a   :  { %v131_v22 = vsel %vm48_vm7, %v130_v20, %v129_v19 }
  0x5b   :  { %v134_v23 = vsel %vm47_vm8, %v273_v6, %v131_v22 }
  0x5c   :  { %183 = vcosq.f32 %v134_v23 }
  0x5d   :  { %185 = vsinq.f32 %v134_v23 }
  0x66   :  { %v184_v27 = vpop.eup %183 }
  0x67   :  { %v186_v28 = vpop.eup %185  ;;  %v145_v29 = vxor.u32 2147483648, %v184_v27 }
  0x68   :  { %v142_v30 = vxor.u32 2147483648, %v186_v28 }
  0x69   :  { %v146_v9 = vsel %vm144_vm9, %v145_v29, %v186_v28 }
  0x6a   :  { %v143_v31 = vsel %vm141_vm10, %v184_v27, %v142_v30 }
  0x6b   :  { %v147_v32 = vsel %vm140_vm11, %v143_v31, %v146_v9 }
  0x6c   :  { %v148_v33 = vsel %vm138_vm12, nan, %v147_v32 }
  0x6d   :  { %149 = vst [vmem:[#allocation5] sm:$0x3] %v148_v33 }
  0x6e   :  { %220 = shalt.err (!%p217_p12)
}
  0x6f   :  { %s221_s27 = scalar_lea.hbm %s308_s2, 32 }
  0x70   :  { %p222_p13 = scmp.ne.s32.totalorder %s308_s2, %s221_s27  ;;  %p225_p0 = scmp.lt.u32.totalorder %s221_s27, %s308_s2 }
  0x72   :  { %p227_p1 = pnand %p225_p0, %p222_p13 }
  0x74   :  { %230 = shalt.err (!%p227_p1)
}
  0x75   :  { %159 = dma.vmem_to_hbm [thread:$0]  %s157_s1, 32, %s308_s2, [#allocation4]  }
  0x76   :  { %233 = dma.done.wait [#allocation4], 32  }
  0x77   :  { %234 = vsyncadd [#allocation4], 4294967264 }
  0x78   :  { %163 = vsyncpa [#allocation3], 1 }
  0x79   :  { %164 = vsyncpa [#allocation4], 1 }

</bundles_post_ra>
